<compile_context>
chip_gen: v5e
topology: v5e:2x2
jax: 0.10.0
libtpu: 0.0.40
codegen_flags: <defaults>
</compile_context>

<pallas_src>
import functools

import numpy as np
import jax
import jax.numpy as jnp
from jax.experimental import pallas as pl
from jax.experimental.pallas import tpu as pltpu


def _round_up(a, b):
    return ((a + b - 1) // b) * b


# ---------------------------------------------------------------------------
# Kernel
# ---------------------------------------------------------------------------
def _welch_kernel(seg_ref, dft_ref, o_ref, *scratch, f_tile, n_pad,
                  segs_per_block, inv_nseg, asd, n_seg_steps, n_k_steps):
    """Grid = (freq-tile [parallel], segment-block [reduce], K-chunk [reduce]).

    Window + one-sided + 1/sum(win)^2 scaling are folded into dft_ref, so one
    MXU matmul per step produces scaled [re | im]; |.|^2 and the per-channel
    segment sum run on the VPU and accumulate into the resident output block.
    """
    i = pl.program_id(1)     # segment-block axis (reduction)
    kk = pl.program_id(2)    # nperseg (K) axis (reduction, innermost)

    @pl.when((i == 0) & (kk == 0))
    def _():
        o_ref[...] = jnp.zeros_like(o_ref)

    # (m_tile, k_tile) x (k_tile, 2*f_tile) -> f32 partial [re | im].
    part = jnp.dot(seg_ref[...], dft_ref[...],
                   preferred_element_type=jnp.float32)

    def _accumulate(z):
        re = z[:, :f_tile]
        im = z[:, f_tile:]
        power = re * re + im * im                        # (m_tile, f_tile)
        # Per-channel segment sum: static strided-slice VPU adds (no
        # selection matmul, no extra streamed input).
        acc = power[0:n_pad, :]
        for s in range(1, segs_per_block):
            acc = acc + power[s * n_pad:(s + 1) * n_pad, :]
        o_ref[...] += acc

    if n_k_steps == 1:
        _accumulate(part)
    else:
        z_ref, = scratch                                 # (m_tile, 2*f_tile) f32

        @pl.when(kk == 0)
        def _():
            z_ref[...] = part

        @pl.when(kk > 0)
        def _():
            z_ref[...] += part

        @pl.when(kk == n_k_steps - 1)
        def _():
            _accumulate(z_ref[...])

    @pl.when((i == n_seg_steps - 1) & (kk == n_k_steps - 1))
    def _():
        m = o_ref[...] * inv_nseg
        if asd:
            m = jnp.sqrt(m)
        o_ref[...] = m


# ---------------------------------------------------------------------------
# Hardware query + VMEM-budget-driven tile planning
# ---------------------------------------------------------------------------
def _tpu_vmem_and_cores():
    phys = None
    try:
        info = pltpu.get_tpu_info()
        phys = getattr(info, "vmem_capacity_bytes", None)
    except Exception:
        phys = None
    if not phys:
        phys = 64 * 1024 * 1024        # conservative: v7x per-TC VMEM
    two_cores = False
    try:
        kind = jax.devices()[0].device_kind.lower()
        two_cores = any(tag in kind for tag in ("v7", "tpu7", "v4", "v5p"))
    except Exception:
        pass
    return int(phys), two_cores


def _plan_tiles(nperseg, nfreq, N, nseg, in_bytes, vmem_budget, two_cores):
    """Pick (f_tile, segs-per-block, k_tile) that fit the VMEM budget."""
    n_pad = _round_up(N, 8)
    f_pad = _round_up(nfreq, 128)
    n128 = f_pad // 128
    if two_cores and n128 > 1 and n128 % 2:
        n128 += 1                       # even #f-tiles so both TCs get work
        f_pad = 128 * n128

    divisors = [d for d in range(1, n128 + 1) if n128 % d == 0]
    if two_cores and any(d % 2 == 0 for d in divisors):
        divisors = [d for d in divisors if d % 2 == 0]

    max_rows = nseg * n_pad
    row_targets = sorted({min(max(t, n_pad), max_rows)
                          for t in (1024, 512, 256, 128, n_pad)}, reverse=True)
    k_options = [nperseg] + [k for k in (8192, 4096, 2048, 1024, 512, 256, 128)
                             if k < nperseg]

    def usage(m_tile, k_tile, f_tile, k_tiled):
        u = 2 * m_tile * k_tile * in_bytes          # segment rows (2x buffered)
        u += 2 * k_tile * 2 * f_tile * in_bytes     # [cos|sin] DFT (2x buffered)
        u += 2 * n_pad * f_tile * 4                 # resident output block
        u += m_tile * 2 * f_tile * 4                # matmul result temporary
        u += m_tile * f_tile * 4                    # |.|^2 temporary
        if k_tiled:
            u += m_tile * 2 * f_tile * 4            # z accumulator scratch
        return u

    best = None
    for nft in divisors:
        f_tile = f_pad // nft
        for rows in row_targets:
            spb = max(1, min(nseg, rows // n_pad))
            m_tile = spb * n_pad
            for k_tile in k_options:
                k_tiled = k_tile < nperseg
                if usage(m_tile, k_tile, f_tile, k_tiled) > vmem_budget:
                    continue
                healthy = (m_tile >= min(256, max_rows)
                           and k_tile >= min(1024, nperseg))
                key = (healthy, -nft, k_tile, m_tile)
                if best is None or key > best[0]:
                    best = (key, (nft, f_tile, spb, m_tile, k_tile))
    if best is None:
        # Nothing fits the budget even at minimal tiles; take the smallest
        # footprint and let the compiler do its best.
        k_tile = 128 if nperseg > 128 else nperseg
        best = (None, (n128, 128, 1, n_pad, k_tile))

    nft, f_tile, spb, m_tile, k_tile = best[1]
    return dict(f_pad=f_pad, f_tile=f_tile, n_ftiles=nft, n_pad=n_pad,
                segs_per_block=spb, m_tile=m_tile, k_tile=k_tile)


# ---------------------------------------------------------------------------
# Public wrapper (TorchWelch.forward equivalent, average='mean')
# ---------------------------------------------------------------------------
def welch_psd(x, *, sample_rate, fftlength, overlap=None, average="mean",
              asd=False, precision="bfloat16"):
    """JAX/Pallas equivalent of TorchWelch.forward (average='mean').

    precision: "bfloat16" (MXU throughput mode, f32 accumulation) or
               "float32"  (exact-ish mode).
    """
    if overlap is None:
        overlap = fftlength / 2
    elif overlap >= fftlength:
        raise ValueError(
            "Can't have overlap {} longer than fftlength {}".format(
                overlap, fftlength))
    if average not in ("mean", "median"):
        raise ValueError(
            f'average must be "mean" or "median", got {average} instead')
    if average == "median":
        # TODO(synk): median over segments needs a cross-segment sort /
        # selection network; only the streaming 'mean' reduction is implemented.
        raise NotImplementedError("only average='mean' is implemented")
    if precision not in ("bfloat16", "float32"):
        raise ValueError('precision must be "bfloat16" or "float32"')

    in_dtype = jnp.bfloat16 if precision == "bfloat16" else jnp.float32
    in_bytes = 2 if precision == "bfloat16" else 4

    nperseg = int(fftlength * sample_rate)
    nfreq = nperseg // 2 + 1
    noverlap = int(overlap * sample_rate)
    nstride = nperseg - noverlap

    x = jnp.asarray(x)
    if x.ndim > 2:
        x = x.reshape(x.shape[0], -1)
    N, nsample = x.shape
    if nsample < nperseg:
        raise ValueError(
            "Not enough samples {} in input for number of fft samples {}".format(
                nsample, nperseg))
    nseg = (nsample - nperseg) // nstride + 1

    # ---- per-generation VMEM budget & tile plan ---------------------------
    phys_vmem, two_cores = _tpu_vmem_and_cores()
    vmem_budget = int(phys_vmem * 0.70)      # tile-planning budget
    vmem_limit = int(phys_vmem * 0.85)       # compiler cap, headroom kept
    plan = _plan_tiles(nperseg, nfreq, N, nseg, in_bytes, vmem_budget,
                       two_cores)
    f_pad = plan["f_pad"]
    f_tile = plan["f_tile"]
    n_ftiles = plan["n_ftiles"]
    n_pad = plan["n_pad"]
    spb = plan["segs_per_block"]
    m_tile = plan["m_tile"]
    k_tile = plan["k_tile"]

    nperseg_pad = _round_up(nperseg, k_tile)
    n_k_steps = nperseg_pad // k_tile
    nseg_pad = _round_up(nseg, spb)
    n_seg_steps = nseg_pad // spb

    # ---- static parameters: window / scaling folded into the DFT ----------
    n = np.arange(nperseg, dtype=np.float64)
    window = 0.5 - 0.5 * np.cos(2.0 * np.pi * n / nperseg)   # periodic Hann
    scale = 1.0 / window.sum() ** 2
    onesided = np.ones(nfreq, np.float64)
    if nperseg % 2:
        onesided[1:] = 2.0
    else:
        onesided[1:-1] = 2.0
    sqrt_fac = np.sqrt(onesided * scale)                     # >= 0

    ang = (2.0 * np.pi / nperseg) * n[:, None] \
        * np.arange(nfreq, dtype=np.float64)[None, :]        # (nperseg, nfreq)
    coeff = window[:, None] * sqrt_fac[None, :]              # window folded in
    cosm = np.zeros((nperseg_pad, f_pad), np.float64)
    sinm = np.zeros((nperseg_pad, f_pad), np.float64)
    cosm[:nperseg, :nfreq] = np.cos(ang) * coeff
    sinm[:nperseg, :nfreq] = -np.sin(ang) * coeff
    # Column layout per frequency tile j: [cos block | sin block], so one
    # (k_tile, 2*f_tile) BlockSpec slice grabs matching real/imag columns.
    dft = np.stack(
        [cosm.reshape(nperseg_pad, n_ftiles, f_tile),
         sinm.reshape(nperseg_pad, n_ftiles, f_tile)], axis=2,
    ).reshape(nperseg_pad, 2 * f_pad).astype(np.float32)
    dft_dev = jnp.asarray(dft, dtype=in_dtype)

    # ---- wrapper-side segment staging (cast first -> half-size in bf16) ---
    x_in = x.astype(in_dtype)
    idx = ((np.arange(nseg) * nstride)[:, None]
           + np.arange(nperseg)[None, :]).astype(np.int32)
    segs = jnp.transpose(x_in[:, idx], (1, 0, 2))            # (nseg, N, nperseg)
    segs = jnp.pad(segs, ((0, nseg_pad - nseg), (0, n_pad - N),
                          (0, nperseg_pad - nperseg)))
    segs = segs.reshape(nseg_pad * n_pad, nperseg_pad)       # zero rows -> 0 power

    kernel = functools.partial(
        _welch_kernel, f_tile=f_tile, n_pad=n_pad, segs_per_block=spb,
        inv_nseg=1.0 / nseg, asd=asd, n_seg_steps=n_seg_steps,
        n_k_steps=n_k_steps)

    scratch_shapes = []
    if n_k_steps > 1:
        scratch_shapes.append(pltpu.VMEM((m_tile, 2 * f_tile), jnp.float32))

    grid_spec = pltpu.PrefetchScalarGridSpec(
        num_scalar_prefetch=0,
        grid=(n_ftiles, n_seg_steps, n_k_steps),
        in_specs=[
            pl.BlockSpec((m_tile, k_tile), lambda jf, i, kk: (i, kk)),       # rows
            pl.BlockSpec((k_tile, 2 * f_tile), lambda jf, i, kk: (kk, jf)),  # DFT
        ],
        out_specs=pl.BlockSpec((n_pad, f_tile), lambda jf, i, kk: (0, jf)),
        scratch_shapes=tuple(scratch_shapes),
    )

    # TODO(synk): consider pltpu.CORE_PARALLEL for the frequency axis on v7x
    # once validated; plain "parallel" + even n_ftiles is used here.
    out = pl.pallas_call(
        kernel,
        out_shape=jax.ShapeDtypeStruct((n_pad, f_pad), jnp.float32),
        grid_spec=grid_spec,
        compiler_params=pltpu.CompilerParams(
            dimension_semantics=("parallel", "arbitrary", "arbitrary"),
            vmem_limit_bytes=vmem_limit),
    )(segs, dft_dev)

    return out[:N, :nfreq]


# ---------------------------------------------------------------------------
# Pure-JAX reference mirroring the PyTorch forward (average='mean')
# ---------------------------------------------------------------------------
def welch_psd_reference(x, *, sample_rate, fftlength, overlap=None, asd=False):
    if overlap is None:
        overlap = fftlength / 2
    nperseg = int(fftlength * sample_rate)
    noverlap = int(overlap * sample_rate)
    nstride = nperseg - noverlap
    if x.ndim > 2:
        x = x.reshape(x.shape[0], -1)
    N, nsample = x.shape
    nseg = (nsample - nperseg) // nstride + 1

    n = jnp.arange(nperseg, dtype=jnp.float32)
    window = 0.5 - 0.5 * jnp.cos(2.0 * jnp.pi * n / nperseg)
    scale = 1.0 / jnp.sum(window) ** 2

    psd = []
    for i in range(nseg):
        seg = x[:, i * nstride:i * nstride + nperseg] * window
        fd = jnp.fft.rfft(seg, axis=1)
        psd.append(jnp.abs(fd) ** 2)
    psd = jnp.stack(psd, axis=0)
    if nperseg % 2:
        psd = psd.at[:, :, 1:].multiply(2.0)
    else:
        psd = psd.at[:, :, 1:-1].multiply(2.0)
    psd = psd * scale
    psd = jnp.mean(psd, axis=0)
    if asd:
        psd = jnp.sqrt(psd)
    return psd


if __name__ == "__main__":
    # Small, deterministic config: sample_rate=64 Hz, fftlength=1 s ->
    # nperseg=64, nfreq=33, noverlap=32, nstride=32; 4 channels, 256 samples
    # -> nseg=7 overlapping segments.
    sample_rate = 64.0
    fftlength = 1.0

    key = jax.random.PRNGKey(0)
    x = jax.random.normal(key, (4, 256), dtype=jnp.float32)

    ref_psd = welch_psd_reference(x, sample_rate=sample_rate,
                                  fftlength=fftlength, asd=False)
    ref_asd = welch_psd_reference(x, sample_rate=sample_rate,
                                  fftlength=fftlength, asd=True)

    # Exact-ish f32 path (PSD + ASD epilogue).
    out_f32 = jax.block_until_ready(
        welch_psd(x, sample_rate=sample_rate, fftlength=fftlength,
                  average="mean", asd=False, precision="float32"))
    np.testing.assert_allclose(np.asarray(out_f32), np.asarray(ref_psd),
                               rtol=2e-3, atol=1e-6)

    out_asd = jax.block_until_ready(
        welch_psd(x, sample_rate=sample_rate, fftlength=fftlength,
                  average="mean", asd=True, precision="float32"))
    np.testing.assert_allclose(np.asarray(out_asd), np.asarray(ref_asd),
                               rtol=2e-3, atol=1e-6)

    # Throughput (bf16-operand) path; power is quadratic in the bf16 inputs,
    # so the tolerance is looser.
    out_bf16 = jax.block_until_ready(
        welch_psd(x, sample_rate=sample_rate, fftlength=fftlength,
                  average="mean", asd=False, precision="bfloat16"))
    np.testing.assert_allclose(np.asarray(out_bf16), np.asarray(ref_psd),
                               rtol=8e-2, atol=1e-4)

    print("KERNEL_OK")
</pallas_src>

<mosaic_0001>
module attributes {stable_mosaic.version = 11 : i64} {
  func.func @_welch_kernel(%arg0: i32, %arg1: i32, %arg2: i32, %arg3: memref<56x64xf32, #tpu.memory_space<vmem>>, %arg4: memref<64x256xf32, #tpu.memory_space<vmem>>, %arg5: memref<8x128xf32, #tpu.memory_space<vmem>>) attributes {dimension_semantics = [#tpu.dimension_semantics<parallel>, #tpu.dimension_semantics<arbitrary>, #tpu.dimension_semantics<arbitrary>], iteration_bounds = array<i64: 1, 1, 1>, scalar_prefetch = 0 : i64, scratch_operands = 0 : i64, tpu.core_type = #tpu.core_type<tc>, window_params = [{transform_indices = @transform_0, window_bounds = array<i64: 56, 64>}, {transform_indices = @transform_1, window_bounds = array<i64: 64, 256>}, {transform_indices = @transform_2, window_bounds = array<i64: 8, 128>}]} {
    %c0_i32 = arith.constant 0 : i32
    %0 = arith.cmpi eq, %arg1, %c0_i32 : i32
    %c0_i32_0 = arith.constant 0 : i32
    %1 = arith.cmpi eq, %arg2, %c0_i32_0 : i32
    %2 = arith.andi %0, %1 : i1
    %3 = arith.extui %2 : i1 to i32
    %c0_i32_1 = arith.constant 0 : i32
    %4 = arith.cmpi ne, %3, %c0_i32_1 : i32
    scf.if %4 {
      %cst_12 = arith.constant 0.000000e+00 : f32
      %34 = vector.broadcast %cst_12 : f32 to vector<8x128xf32>
      %c0_13 = arith.constant 0 : index
      %c0_14 = arith.constant 0 : index
      %35 = vector.load %arg5[%c0_13, %c0_14] : memref<8x128xf32, #tpu.memory_space<vmem>>, vector<8x128xf32>
      tpu.vector_store %arg5[%c0_13, %c0_14], %34 {strides = array<i32>} : memref<8x128xf32, #tpu.memory_space<vmem>>, vector<8x128xf32>,
    } else {
    }
    %c0 = arith.constant 0 : index
    %c0_2 = arith.constant 0 : index
    %5 = vector.load %arg3[%c0, %c0_2] : memref<56x64xf32, #tpu.memory_space<vmem>>, vector<56x64xf32>
    %c0_3 = arith.constant 0 : index
    %c0_4 = arith.constant 0 : index
    %6 = vector.load %arg4[%c0_3, %c0_4] : memref<64x256xf32, #tpu.memory_space<vmem>>, vector<64x256xf32>
    %cst = arith.constant dense<0.000000e+00> : vector<56x256xf32>
    %7 = tpu.matmul %5, %6, %cst {dimension_numbers = #tpu.dot_dimension_numbers<[1], [0], [0], [1], [0, 0, 1, 1], [], []>} : vector<56x64xf32>, vector<64x256xf32>, vector<56x256xf32> -> vector<56x256xf32>
    %8 = vector.extract_strided_slice %7 {offsets = [0, 0], sizes = [56, 128], strides = [1, 1]} : vector<56x256xf32> to vector<56x128xf32>
    %9 = vector.extract_strided_slice %7 {offsets = [0, 128], sizes = [56, 128], strides = [1, 1]} : vector<56x256xf32> to vector<56x128xf32>
    %10 = arith.mulf %8, %8 : vector<56x128xf32>
    %11 = arith.mulf %9, %9 : vector<56x128xf32>
    %12 = arith.addf %10, %11 : vector<56x128xf32>
    %13 = vector.extract_strided_slice %12 {offsets = [0, 0], sizes = [8, 128], strides = [1, 1]} : vector<56x128xf32> to vector<8x128xf32>
    %14 = vector.extract_strided_slice %12 {offsets = [8, 0], sizes = [8, 128], strides = [1, 1]} : vector<56x128xf32> to vector<8x128xf32>
    %15 = arith.addf %13, %14 : vector<8x128xf32>
    %16 = vector.extract_strided_slice %12 {offsets = [16, 0], sizes = [8, 128], strides = [1, 1]} : vector<56x128xf32> to vector<8x128xf32>
    %17 = arith.addf %15, %16 : vector<8x128xf32>
    %18 = vector.extract_strided_slice %12 {offsets = [24, 0], sizes = [8, 128], strides = [1, 1]} : vector<56x128xf32> to vector<8x128xf32>
    %19 = arith.addf %17, %18 : vector<8x128xf32>
    %20 = vector.extract_strided_slice %12 {offsets = [32, 0], sizes = [8, 128], strides = [1, 1]} : vector<56x128xf32> to vector<8x128xf32>
    %21 = arith.addf %19, %20 : vector<8x128xf32>
    %22 = vector.extract_strided_slice %12 {offsets = [40, 0], sizes = [8, 128], strides = [1, 1]} : vector<56x128xf32> to vector<8x128xf32>
    %23 = arith.addf %21, %22 : vector<8x128xf32>
    %24 = vector.extract_strided_slice %12 {offsets = [48, 0], sizes = [8, 128], strides = [1, 1]} : vector<56x128xf32> to vector<8x128xf32>
    %25 = arith.addf %23, %24 : vector<8x128xf32>
    %c0_5 = arith.constant 0 : index
    %c0_6 = arith.constant 0 : index
    %26 = vector.load %arg5[%c0_5, %c0_6] : memref<8x128xf32, #tpu.memory_space<vmem>>, vector<8x128xf32>
    %27 = arith.addf %26, %25 : vector<8x128xf32>
    %c0_7 = arith.constant 0 : index
    %c0_8 = arith.constant 0 : index
    %28 = vector.load %arg5[%c0_7, %c0_8] : memref<8x128xf32, #tpu.memory_space<vmem>>, vector<8x128xf32>
    tpu.vector_store %arg5[%c0_7, %c0_8], %27 {strides = array<i32>} : memref<8x128xf32, #tpu.memory_space<vmem>>, vector<8x128xf32>,
    %c0_i32_9 = arith.constant 0 : i32
    %29 = arith.cmpi eq, %arg1, %c0_i32_9 : i32
    %c0_i32_10 = arith.constant 0 : i32
    %30 = arith.cmpi eq, %arg2, %c0_i32_10 : i32
    %31 = arith.andi %29, %30 : i1
    %32 = arith.extui %31 : i1 to i32
    %c0_i32_11 = arith.constant 0 : i32
    %33 = arith.cmpi ne, %32, %c0_i32_11 : i32
    scf.if %33 {
      %c0_12 = arith.constant 0 : index
      %c0_13 = arith.constant 0 : index
      %34 = vector.load %arg5[%c0_12, %c0_13] : memref<8x128xf32, #tpu.memory_space<vmem>>, vector<8x128xf32>
      %cst_14 = arith.constant 0.142857149 : f32
      %35 = vector.broadcast %cst_14 : f32 to vector<8x128xf32>
      %36 = arith.mulf %34, %35 : vector<8x128xf32>
      %c0_15 = arith.constant 0 : index
      %c0_16 = arith.constant 0 : index
      %37 = vector.load %arg5[%c0_15, %c0_16] : memref<8x128xf32, #tpu.memory_space<vmem>>, vector<8x128xf32>
      tpu.vector_store %arg5[%c0_15, %c0_16], %36 {strides = array<i32>} : memref<8x128xf32, #tpu.memory_space<vmem>>, vector<8x128xf32>,
    } else {
    }
    return
  }
  func.func @transform_0(%arg0: i32, %arg1: i32, %arg2: i32) -> (i32, i32) {
    %c0_i32 = arith.constant 0 : i32
    return %arg1, %arg2 : i32, i32
  }
  func.func @transform_1(%arg0: i32, %arg1: i32, %arg2: i32) -> (i32, i32) {
    %c0_i32 = arith.constant 0 : i32
    return %arg2, %arg0 : i32, i32
  }
  func.func @transform_2(%arg0: i32, %arg1: i32, %arg2: i32) -> (i32, i32) {
    %c0_i32 = arith.constant 0 : i32
    %c0_i32_0 = arith.constant 0 : i32
    return %c0_i32, %arg0 : i32, i32
  }
}

</mosaic_0001>

<bundles_post_ra>
// kernel: tpu_custom_call.1
= control target key start
LH: loop header
LB: loop body
LE: loop exit
PB: predicated region body
PF: predicated region fallthrough
CT: control target
= control target key end

     0   :  { %7 = vsyncpa [#allocation3], 0  ;;  %s386_s0 = inlined_call_operand.hbm [shape: f32[56,64], index: 0, kind: input, shape index: {}]   ;;  %s387_s1 = inlined_call_operand.hbm [shape: f32[64,256], index: 1, kind: input, shape index: {}]   ;;  %s388_s2 = inlined_call_operand.hbm [shape: f32[8,128], index: 2, kind: output, shape index: {}]  }
   0x1   :  { %8 = vsyncpa [#allocation6], 0 }
   0x2   :  { %9 = vsyncpa [#allocation4], 0  ;;  %s14_s11 = sshll.u32 %s386_s0, 4  ;;  %s341_s12 = smov [#allocation2]   ;;  %s15_s11 = int_to_ptr.hbm [resolvable:$true] %s14_s11 }
   0x3   :  { %s16_s13 = sshll.u32 %s341_s12, 4  ;;  %s27_s16 = sshll.u32 %s387_s1, 4  ;;  %s17_s13 = int_to_ptr.vmem [resolvable:$true] %s16_s13  ;;  %s28_s16 = int_to_ptr.hbm [resolvable:$true] %s27_s16 }
   0x4   :  { %s342_s17 = smov 128   ;;  %s343_s18 = smov 8  }
   0x5   :  { %22 = dma.hbm_to_vmem [thread:$0]  %s15_s11, 896, %s17_s13, [#allocation3], %s342_s17, %s342_s17, %s343_s18  }
   0x6   :  { %s344_s19 = smov [#allocation5]   ;;  %s345_s21 = smov 256  }
   0x7   :  { %s29_s20 = sshll.u32 %s344_s19, 4  ;;  %s346_s22 = smov 16   ;;  %s30_s20 = int_to_ptr.vmem [resolvable:$true] %s29_s20 }
   0x8   :  { %35 = dma.hbm_to_vmem [thread:$0]  %s28_s16, 2048, %s30_s20, [#allocation6], %s345_s21, %s345_s21, %s346_s22  }
   0x9   :  { %335 = dma.done.wait [#allocation3], 896  }
   0xa   :  { %336 = vsyncadd [#allocation3], 4294966400 }
   0xb   :  { %337 = dma.done.wait [#allocation6], 2048  }
   0xc   :  { %338 = vsyncadd [#allocation6], 4294965248  ;;  %v72_v0 = vld [vmem:[#allocation5 + $0x70] sm:$0xff]  ;;  %v73_v1 = vld [vmem:[#allocation5 + $0x78] sm:$0xff]  ;;  %vm74_vm0 = vcmask 523264   ;;  %s347_s0 = smov [#allocation7]  }
   0xd   :  { %v70_v2 = vld [vmem:[#allocation5 + $0x60] sm:$0xff]  ;;  %104 = vmatpush.msra.mxu0 %v72_v0  ;;  %239 = vmatpush.msra.mxu2 %v72_v0  ;;  %v71_v3 = vld [vmem:[#allocation5 + $0x68] sm:$0xff]  ;;  %v68_v4 = vld [vmem:[#allocation5 + $0x50] sm:$0xff]  ;;  %s212_s1 = sshll.u32 %s347_s0, 4  ;;  %s214_s25 = sshll.u32 %s388_s2, 4  ;;  %s213_s1 = int_to_ptr.vmem [resolvable:$true] %s212_s1  ;;  %s215_s25 = int_to_ptr.hbm [resolvable:$true] %s214_s25 }
   0xe   :  { %142 = vmatpush.msra.mxu1 %v73_v1  ;;  %247 = vmatpush.msra.mxu3 %v73_v1  ;;  %v69_v5 = vld [vmem:[#allocation5 + $0x58] sm:$0xff]  ;;  %v66_v6 = vld [vmem:[#allocation5 + $0x40] sm:$0xff]  ;;  %v67_v7 = vld [vmem:[#allocation5 + $0x48] sm:$0xff] }
   0xf   :  { %105 = vmatpush.msra.mxu0 %v70_v2  ;;  %240 = vmatpush.msra.mxu2 %v70_v2  ;;  %v64_v8 = vld [vmem:[#allocation5 + $0x30] sm:$0xff]  ;;  %v65_v9 = vld [vmem:[#allocation5 + $0x38] sm:$0xff]  ;;  %v62_v10 = vld [vmem:[#allocation5 + $0x20] sm:$0xff] }
  0x10   :  { %143 = vmatpush.msra.mxu1 %v71_v3  ;;  %248 = vmatpush.msra.mxu3 %v71_v3  ;;  %v63_v11 = vld [vmem:[#allocation5 + $0x28] sm:$0xff]  ;;  %v60_v12 = vld [vmem:[#allocation5 + $0x10] sm:$0xff]  ;;  %v61_v13 = vld [vmem:[#allocation5 + $0x18] sm:$0xff] }
  0x11   :  { %106 = vmatpush.msra.mxu0 %v68_v4  ;;  %241 = vmatpush.msra.mxu2 %v68_v4  ;;  %v58_v14 = vld [vmem:[#allocation5] sm:$0xff]  ;;  %v59_v15 = vld [vmem:[#allocation5 + $0x8] sm:$0xff]  ;;  %v52_v19 = vld [vmem:[#allocation2 + $0x8] sm:$0xff] }
  0x12   :  { %144 = vmatpush.msra.mxu1 %v69_v5  ;;  %249 = vmatpush.msra.mxu3 %v69_v5  ;;  %v51_v16 = vld [vmem:[#allocation2] sm:$0xff]  ;;  %v54_v17 = vld [vmem:[#allocation2 + $0x18] sm:$0xff]  ;;  %v56_v20 = vld [vmem:[#allocation2 + $0x28] sm:$0xff] }
  0x13   :  { %107 = vmatpush.msra.mxu0 %v66_v6  ;;  %242 = vmatpush.msra.mxu2 %v66_v6  ;;  %v55_v18 = vld [vmem:[#allocation2 + $0x20] sm:$0xff]  ;;  %v53_v21 = vld [vmem:[#allocation2 + $0x10] sm:$0xff] }
  0x14   :  { %145 = vmatpush.msra.mxu1 %v67_v7  ;;  %250 = vmatpush.msra.mxu3 %v67_v7  ;;  %v57_v22 = vld [vmem:[#allocation2 + $0x30] sm:$0xff] }
  0x15   :  { %108 = vmatpush.msra.mxu0 %v64_v8  ;;  %243 = vmatpush.msra.mxu2 %v64_v8 }
  0x16   :  { %146 = vmatpush.msra.mxu1 %v65_v9  ;;  %251 = vmatpush.msra.mxu3 %v65_v9 }
  0x17   :  { %109 = vmatpush.msra.mxu0 %v62_v10  ;;  %244 = vmatpush.msra.mxu2 %v62_v10 }
  0x18   :  { %147 = vmatpush.msra.mxu1 %v63_v11  ;;  %252 = vmatpush.msra.mxu3 %v63_v11 }
  0x19   :  { %110 = vmatpush.msra.mxu0 %v60_v12  ;;  %245 = vmatpush.msra.mxu2 %v60_v12 }
  0x1a   :  { %148 = vmatpush.msra.mxu1 %v61_v13  ;;  %253 = vmatpush.msra.mxu3 %v61_v13 }
  0x1b   :  { %111 = vmatpush.msra.mxu0 %v58_v14  ;;  %246 = vmatpush.msra.mxu2 %v58_v14 }
  0x1c   :  { %149 = vmatpush.msra.mxu1 %v59_v15  ;;  %225 = vmatmul.msk.f32.vlgmr.msra.gmra.mxu0 %vm74_vm0, %v51_v16 }
  0x1d   :  { %228 = vmatmul.msk.f32.vlgmr.msra.gmra.mxu2 %vm74_vm0, %v54_v17  ;;  %232 = vmatmul.msk.f32.vlgmr.msra.gmra.mxu1 %vm74_vm0, %v51_v16 }
  0x1e   :  { %254 = vmatpush.msra.mxu3 %v59_v15 }
  0x1f   :  { %236 = vmatmul.msk.f32.vlgmr.msra.gmra.mxu3 %vm74_vm0, %v55_v18 }
  0x24   :  { %226 = vmatmul.msk.f32.gmra.mxu0 %vm74_vm0, %v52_v19 }
  0x25   :  { %229 = vmatmul.msk.f32.gmra.mxu2 %vm74_vm0, %v55_v18  ;;  %233 = vmatmul.msk.f32.gmra.mxu1 %vm74_vm0, %v52_v19 }
  0x27   :  { %237 = vmatmul.msk.f32.gmra.mxu3 %vm74_vm0, %v56_v20 }
  0x2c   :  { %227 = vmatmul.msk.f32.gmra.mxu0 %vm74_vm0, %v53_v21 }
  0x2d   :  { %230 = vmatmul.msk.f32.gmra.mxu2 %vm74_vm0, %v56_v20  ;;  %234 = vmatmul.msk.f32.gmra.mxu1 %vm74_vm0, %v53_v21 }
  0x2f   :  { %238 = vmatmul.msk.f32.gmra.mxu3 %vm74_vm0, %v57_v22 }
  0x35   :  { %231 = vmatmul.msk.f32.gmra.mxu2 %vm74_vm0, %v57_v22  ;;  %235 = vmatmul.msk.f32.gmra.mxu1 %vm74_vm0, %v54_v17 }
  0x99   :  { %v113_v23 = vpop.f32.mrf.mxu0 }
  0x9a   :  { %v151_v24 = vpop.f32.mrf.mxu1  ;;  %v172_v35 = vmul.f32 %v113_v23, %v113_v23 }
  0x9b   :  { %v179_v36 = vmul.f32 %v151_v24, %v151_v24 }
  0x9d   :  { %v186_v41 = vadd.f32 %v179_v36, %v172_v35 }
  0xa0   :  { %v122_v25 = vpop.f32.mrf.mxu2 }
  0xa1   :  { %v116_v26 = vpop.f32.mrf.mxu0  ;;  %v175_v43 = vmul.f32 %v122_v25, %v122_v25 }
  0xa2   :  { %v154_v27 = vpop.f32.mrf.mxu1  ;;  %v163_v28 = vpop.f32.mrf.mxu3  ;;  %v173_v33 = vmul.f32 %v116_v26, %v116_v26 }
  0xa3   :  { %v180_v34 = vmul.f32 %v154_v27, %v154_v27  ;;  %v183_v47 = vmul.f32 %v163_v28, %v163_v28 }
  0xa5   :  { %v187_v39 = vadd.f32 %v180_v34, %v173_v33 }
  0xa7   :  { %v193_v45 = vadd.f32 %v187_v39, %v186_v41 }
  0xa8   :  { %v125_v29 = vpop.f32.mrf.mxu2 }
  0xa9   :  { %v119_v30 = vpop.f32.mrf.mxu0  ;;  %v176_v46 = vmul.f32 %v125_v29, %v125_v29 }
  0xaa   :  { %v157_v31 = vpop.f32.mrf.mxu1  ;;  %v166_v32 = vpop.f32.mrf.mxu3  ;;  %v174_v37 = vmul.f32 %v119_v30, %v119_v30 }
  0xab   :  { %v181_v38 = vmul.f32 %v157_v31, %v157_v31  ;;  %v184_v52 = vmul.f32 %v166_v32, %v166_v32  ;;  %v190_v54 = vadd.f32 %v183_v47, %v176_v46 }
  0xad   :  { %v188_v42 = vadd.f32 %v181_v38, %v174_v37 }
  0xaf   :  { %v194_v50 = vadd.f32 %v193_v45, %v188_v42 }
  0xb0   :  { %v128_v40 = vpop.f32.mrf.mxu2 }
  0xb1   :  { %v177_v51 = vmul.f32 %v128_v40, %v128_v40 }
  0xb2   :  { %v160_v44 = vpop.f32.mrf.mxu1  ;;  %v169_v49 = vpop.f32.mrf.mxu3 }
  0xb3   :  { %v182_v48 = vmul.f32 %v160_v44, %v160_v44  ;;  %v185_v56 = vmul.f32 %v169_v49, %v169_v49  ;;  %v191_v58 = vadd.f32 %v184_v52, %v177_v51 }
  0xb5   :  { %v189_v53 = vadd.f32 %v182_v48, %v175_v43 }
  0xb7   :  { %v195_v55 = vadd.f32 %v194_v50, %v189_v53 }
  0xb8   :  { %v131_v57 = vpop.f32.mrf.mxu2 }
  0xb9   :  { %v196_v59 = vadd.f32 %v195_v55, %v190_v54  ;;  %v178_v60 = vmul.f32 %v131_v57, %v131_v57 }
  0xbb   :  { %v192_v61 = vadd.f32 %v185_v56, %v178_v60  ;;  %v197_v62 = vadd.f32 %v196_v59, %v191_v58 }
  0xbd   :  { %v198_v63 = vadd.f32 %v197_v62, %v192_v61 }
  0xbf   :  { %v205_v0 = vmul.f32 0.14285715, %v198_v63 }
  0xc1   :  { %206 = vst [vmem:[#allocation7] sm:$0xff] %v205_v0 }
  0xc2   :  { %217 = dma.vmem_to_hbm [thread:$0]  %s213_s1, 128, %s215_s25, [#allocation4]  }
  0xc3   :  { %339 = dma.done.wait [#allocation4], 128  }
  0xc4   :  { %340 = vsyncadd [#allocation4], 4294967168 }
  0xc5   :  { %222 = vsyncpa [#allocation3], 1 }
  0xc6   :  { %223 = vsyncpa [#allocation6], 1 }
  0xc7   :  { %224 = vsyncpa [#allocation4], 1 }

</bundles_post_ra>
